<compile_context>
chip_gen: v7x
topology: tpu7x:2x2x1
jax: 0.10.0
libtpu: 0.0.40
codegen_flags: <defaults>
</compile_context>

<pallas_src>
import jax
import jax.numpy as jnp
from jax.experimental import pallas as pl
from jax.experimental.pallas import tpu as pltpu


def _round_up(x, m):
    return ((x + m - 1) // m) * m


def _critic_kernel(x_ref, w1_ref, b1_ref, w2_ref, b2_ref, w3_ref, b3_ref, o_ref):
    cdt = w1_ref.dtype  # MXU operand dtype (bf16 or f32); accumulation is f32.
    # Layer 1: (TB, obs) @ (obs, HP) + (1, HP) -> tanh  (f32 math after the MXU)
    h1 = jnp.tanh(
        jnp.dot(x_ref[...], w1_ref[...], preferred_element_type=jnp.float32)
        + b1_ref[...]
    )
    # Layer 2: (TB, HP) @ (HP, HP) + (1, HP) -> tanh
    h2 = jnp.tanh(
        jnp.dot(h1.astype(cdt), w2_ref[...], preferred_element_type=jnp.float32)
        + b2_ref[...]
    )
    # Layer 3: (TB, HP) @ (HP, 1) + (1, 1)  (no activation)
    v = (
        jnp.dot(h2.astype(cdt), w3_ref[...], preferred_element_type=jnp.float32)
        + b3_ref[...]
    )
    o_ref[...] = v.astype(o_ref.dtype)


def critic_forward(state, params, *, tb=512, use_bf16=True):
    """state: (B, obs_dim) float32. params are the 'true' 64-hidden weights.

    Returns (B, 1) float32. Padding/casting to the lane-dense / bf16 kernel
    layout is done here; the math is identical to the torch module (up to
    bf16 operand quantization if use_bf16=True).
    """
    w1, b1, w2, b2, w3, b3 = params
    B, obs_dim = state.shape
    H = w1.shape[1]                       # 64
    HP = _round_up(max(H, 128), 128)      # lane-dense hidden width (128)

    cdt = jnp.bfloat16 if use_bf16 else jnp.float32
    itemsz = 2 if use_bf16 else 4

    # --- batch tile: multiple of 8, capped so 2x (double buffer) state tiles
    #     stay well inside scoped VMEM on every chip generation.
    max_tb = max(8, ((8 * 1024 * 1024) // (2 * obs_dim * itemsz)) // 8 * 8)
    tb = max(8, min(_round_up(tb, 8), max_tb, _round_up(B, 8)))
    Bp = _round_up(B, tb)

    # --- pad state rows to a multiple of tb; cast MXU operands to bf16.
    x = state
    if Bp != B:
        x = jnp.pad(x, ((0, Bp - B), (0, 0)))
    x = x.astype(cdt)

    # --- zero-pad hidden 64 -> 128 (exact: tanh(0)=0 so pad lanes contribute 0)
    w1p = jnp.zeros((obs_dim, HP), cdt).at[:, :H].set(w1.astype(cdt))
    b1p = jnp.zeros((1, HP), jnp.float32).at[:, :H].set(b1)
    w2p = jnp.zeros((HP, HP), cdt).at[:H, :H].set(w2.astype(cdt))
    b2p = jnp.zeros((1, HP), jnp.float32).at[:, :H].set(b2)
    w3p = jnp.zeros((HP, 1), cdt).at[:H, :].set(w3.astype(cdt))
    b3p = b3.astype(jnp.float32)          # (1, 1)

    grid = (Bp // tb,)

    const = lambda shape: pl.BlockSpec(shape, lambda i: (0,) * len(shape))

    flops = 2 * Bp * (obs_dim * HP + HP * HP + HP)
    transcendentals = 2 * Bp * HP
    bytes_accessed = (
        Bp * obs_dim * itemsz                       # state stream
        + (obs_dim * HP + HP * HP + HP) * itemsz    # weights
        + (2 * HP + 1) * 4                          # biases
        + Bp * 1 * 4                                # output
    )

    out = pl.pallas_call(
        _critic_kernel,
        out_shape=jax.ShapeDtypeStruct((Bp, 1), jnp.float32),
        grid=grid,
        in_specs=[
            pl.BlockSpec((tb, obs_dim), lambda i: (i, 0)),  # state: streamed
            const((obs_dim, HP)), const((1, HP)),           # w1, b1: VMEM-resident
            const((HP, HP)), const((1, HP)),                # w2, b2
            const((HP, 1)), const((1, 1)),                  # w3, b3
        ],
        out_specs=pl.BlockSpec((tb, 1), lambda i: (i, 0)),
        compiler_params=pltpu.CompilerParams(
            dimension_semantics=("parallel",),
        ),
        cost_estimate=pl.CostEstimate(
            flops=int(flops),
            transcendentals=int(transcendentals),
            bytes_accessed=int(bytes_accessed),
        ),
    )(x, w1p, b1p, w2p, b2p, w3p, b3p)

    return out[:B]


def init_params(key, obs_dim, hidden=64):
    """Deterministic init mimicking nn.Linear default (uniform +-1/sqrt(fan_in))."""
    ks = jax.random.split(key, 6)

    def lin(kw, kb, fan_in, fan_out):
        bound = 1.0 / jnp.sqrt(fan_in)
        w = jax.random.uniform(kw, (fan_in, fan_out), jnp.float32, -bound, bound)
        b = jax.random.uniform(kb, (1, fan_out), jnp.float32, -bound, bound)
        return w, b

    w1, b1 = lin(ks[0], ks[1], obs_dim, hidden)
    w2, b2 = lin(ks[2], ks[3], hidden, hidden)
    w3, b3 = lin(ks[4], ks[5], hidden, 1)
    return (w1, b1, w2, b2, w3, b3)


if __name__ == "__main__":
    key = jax.random.PRNGKey(0)
    k_params, k_state = jax.random.split(key)

    batch = 8
    obs_dim = 32  # observation_shape

    params = init_params(k_params, obs_dim)
    state = jax.random.normal(k_state, (batch, obs_dim), dtype=jnp.float32)

    v = critic_forward(state, params)
    v = jax.block_until_ready(v)
    assert v.shape == (batch, 1)

    w1, b1, w2, b2, w3, b3 = params

    # Reference 1: same math as the kernel (bf16 operand quantization, f32 accum).
    q = lambda a: a.astype(jnp.bfloat16).astype(jnp.float32)
    r = jnp.tanh(q(state) @ q(w1) + b1)
    r = jnp.tanh(q(r) @ q(w2) + b2)
    ref_bf16 = q(r) @ q(w3) + b3
    assert jnp.allclose(v, ref_bf16, atol=2e-3), "mismatch vs matched-precision ref"

    # Reference 2: the original full-f32 torch semantics (loose tol due to bf16 inputs).
    r = jnp.tanh(state @ w1 + b1)
    r = jnp.tanh(r @ w2 + b2)
    ref_f32 = r @ w3 + b3
    assert jnp.allclose(v, ref_f32, atol=5e-2), "mismatch vs f32 reference"

    print("KERNEL_OK")
</pallas_src>

<mosaic_0001>
module attributes {stable_mosaic.version = 11 : i64} {
  func.func @_critic_kernel(%arg0: i32, %arg1: memref<8x32xbf16, #tpu.memory_space<vmem>>, %arg2: memref<32x128xbf16, #tpu.memory_space<vmem>>, %arg3: memref<1x128xf32, #tpu.memory_space<vmem>>, %arg4: memref<128x128xbf16, #tpu.memory_space<vmem>>, %arg5: memref<1x128xf32, #tpu.memory_space<vmem>>, %arg6: memref<128x1xbf16, #tpu.memory_space<vmem>>, %arg7: memref<1x1xf32, #tpu.memory_space<vmem>>, %arg8: memref<8x1xf32, #tpu.memory_space<vmem>>) attributes {dimension_semantics = [#tpu.dimension_semantics<parallel>], iteration_bounds = array<i64: 1>, scalar_prefetch = 0 : i64, scratch_operands = 0 : i64, tpu.core_type = #tpu.core_type<tc>, window_params = [{transform_indices = @transform_0, window_bounds = array<i64: 8, 32>}, {pipeline_mode = #tpu.pipeline_mode<synchronous>, transform_indices = @transform_1, window_bounds = array<i64: 32, 128>}, {pipeline_mode = #tpu.pipeline_mode<synchronous>, transform_indices = @transform_2, window_bounds = array<i64: 1, 128>}, {pipeline_mode = #tpu.pipeline_mode<synchronous>, transform_indices = @transform_3, window_bounds = array<i64: 128, 128>}, {pipeline_mode = #tpu.pipeline_mode<synchronous>, transform_indices = @transform_4, window_bounds = array<i64: 1, 128>}, {pipeline_mode = #tpu.pipeline_mode<synchronous>, transform_indices = @transform_5, window_bounds = array<i64: 128, 1>}, {pipeline_mode = #tpu.pipeline_mode<synchronous>, transform_indices = @transform_6, window_bounds = array<i64: 1, 1>}, {transform_indices = @transform_7, window_bounds = array<i64: 8, 1>}]} {
    %c0 = arith.constant 0 : index
    %c0_0 = arith.constant 0 : index
    %0 = vector.load %arg1[%c0, %c0_0] : memref<8x32xbf16, #tpu.memory_space<vmem>>, vector<8x32xbf16>
    %c0_1 = arith.constant 0 : index
    %c0_2 = arith.constant 0 : index
    %1 = vector.load %arg2[%c0_1, %c0_2] : memref<32x128xbf16, #tpu.memory_space<vmem>>, vector<32x128xbf16>
    %cst = arith.constant dense<0.000000e+00> : vector<8x128xf32>
    %2 = tpu.matmul %0, %1, %cst {dimension_numbers = #tpu.dot_dimension_numbers<[1], [0], [0], [1], [0, 0, 1, 1], [], []>} : vector<8x32xbf16>, vector<32x128xbf16>, vector<8x128xf32> -> vector<8x128xf32>
    %c0_3 = arith.constant 0 : index
    %c0_4 = arith.constant 0 : index
    %3 = vector.load %arg3[%c0_3, %c0_4] : memref<1x128xf32, #tpu.memory_space<vmem>>, vector<1x128xf32>
    %4 = vector.broadcast %3 : vector<1x128xf32> to vector<8x128xf32>
    %5 = arith.addf %2, %4 : vector<8x128xf32>
    %6 = math.tanh %5 : vector<8x128xf32>
    %7 = arith.truncf %6 : vector<8x128xf32> to vector<8x128xbf16>
    %c0_5 = arith.constant 0 : index
    %c0_6 = arith.constant 0 : index
    %8 = vector.load %arg4[%c0_5, %c0_6] : memref<128x128xbf16, #tpu.memory_space<vmem>>, vector<128x128xbf16>
    %cst_7 = arith.constant dense<0.000000e+00> : vector<8x128xf32>
    %9 = tpu.matmul %7, %8, %cst_7 {dimension_numbers = #tpu.dot_dimension_numbers<[1], [0], [0], [1], [0, 0, 1, 1], [], []>} : vector<8x128xbf16>, vector<128x128xbf16>, vector<8x128xf32> -> vector<8x128xf32>
    %c0_8 = arith.constant 0 : index
    %c0_9 = arith.constant 0 : index
    %10 = vector.load %arg5[%c0_8, %c0_9] : memref<1x128xf32, #tpu.memory_space<vmem>>, vector<1x128xf32>
    %11 = vector.broadcast %10 : vector<1x128xf32> to vector<8x128xf32>
    %12 = arith.addf %9, %11 : vector<8x128xf32>
    %13 = math.tanh %12 : vector<8x128xf32>
    %14 = arith.truncf %13 : vector<8x128xf32> to vector<8x128xbf16>
    %c0_10 = arith.constant 0 : index
    %c0_11 = arith.constant 0 : index
    %15 = vector.load %arg6[%c0_10, %c0_11] : memref<128x1xbf16, #tpu.memory_space<vmem>>, vector<128x1xbf16>
    %cst_12 = arith.constant dense<0.000000e+00> : vector<8x1xf32>
    %16 = tpu.matmul %14, %15, %cst_12 {dimension_numbers = #tpu.dot_dimension_numbers<[1], [0], [0], [1], [0, 0, 1, 1], [], []>} : vector<8x128xbf16>, vector<128x1xbf16>, vector<8x1xf32> -> vector<8x1xf32>
    %c0_13 = arith.constant 0 : index
    %c0_14 = arith.constant 0 : index
    %17 = vector.load %arg7[%c0_13, %c0_14] : memref<1x1xf32, #tpu.memory_space<vmem>>, vector<1x1xf32>
    %18 = vector.broadcast %17 : vector<1x1xf32> to vector<8x1xf32>
    %19 = arith.addf %16, %18 : vector<8x1xf32>
    %c0_15 = arith.constant 0 : index
    %c0_16 = arith.constant 0 : index
    %20 = vector.load %arg8[%c0_15, %c0_16] : memref<8x1xf32, #tpu.memory_space<vmem>>, vector<8x1xf32>
    tpu.vector_store %arg8[%c0_15, %c0_16], %19 {strides = array<i32>} : memref<8x1xf32, #tpu.memory_space<vmem>>, vector<8x1xf32>,
    return
  }
  func.func @transform_0(%arg0: i32) -> (i32, i32) {
    %c0_i32 = arith.constant 0 : i32
    %c0_i32_0 = arith.constant 0 : i32
    return %arg0, %c0_i32 : i32, i32
  }
  func.func @transform_1(%arg0: i32) -> (i32, i32) {
    %c0_i32 = arith.constant 0 : i32
    %c0_i32_0 = arith.constant 0 : i32
    %c0_i32_1 = arith.constant 0 : i32
    return %c0_i32, %c0_i32_0 : i32, i32
  }
  func.func @transform_2(%arg0: i32) -> (i32, i32) {
    %c0_i32 = arith.constant 0 : i32
    %c0_i32_0 = arith.constant 0 : i32
    %c0_i32_1 = arith.constant 0 : i32
    return %c0_i32, %c0_i32_0 : i32, i32
  }
  func.func @transform_3(%arg0: i32) -> (i32, i32) {
    %c0_i32 = arith.constant 0 : i32
    %c0_i32_0 = arith.constant 0 : i32
    %c0_i32_1 = arith.constant 0 : i32
    return %c0_i32, %c0_i32_0 : i32, i32
  }
  func.func @transform_4(%arg0: i32) -> (i32, i32) {
    %c0_i32 = arith.constant 0 : i32
    %c0_i32_0 = arith.constant 0 : i32
    %c0_i32_1 = arith.constant 0 : i32
    return %c0_i32, %c0_i32_0 : i32, i32
  }
  func.func @transform_5(%arg0: i32) -> (i32, i32) {
    %c0_i32 = arith.constant 0 : i32
    %c0_i32_0 = arith.constant 0 : i32
    %c0_i32_1 = arith.constant 0 : i32
    return %c0_i32, %c0_i32_0 : i32, i32
  }
  func.func @transform_6(%arg0: i32) -> (i32, i32) {
    %c0_i32 = arith.constant 0 : i32
    %c0_i32_0 = arith.constant 0 : i32
    %c0_i32_1 = arith.constant 0 : i32
    return %c0_i32, %c0_i32_0 : i32, i32
  }
  func.func @transform_7(%arg0: i32) -> (i32, i32) {
    %c0_i32 = arith.constant 0 : i32
    %c0_i32_0 = arith.constant 0 : i32
    return %arg0, %c0_i32 : i32, i32
  }
}

</mosaic_0001>

<bundles_post_ra>
// kernel: tpu_custom_call.1
= control target key start
LH: loop header
LB: loop body
LE: loop exit
PB: predicated region body
PF: predicated region fallthrough
CT: control target
= control target key end

     0   :  { %s675_s0 = inlined_call_operand.hbm [shape: bf16[8,32], index: 0, kind: input, shape index: {}]   ;;  %s676_s1 = inlined_call_operand.vmem [shape: bf16[32,128], index: 1, kind: input, shape index: {}]   ;;  %s677_s2 = inlined_call_operand.hbm [shape: f32[1,128], index: 2, kind: input, shape index: {}]   ;;  %s678_s3 = inlined_call_operand.vmem [shape: bf16[128,128], index: 3, kind: input, shape index: {}]   ;;  %s679_s4 = inlined_call_operand.vmem [shape: f32[1,128], index: 4, kind: input, shape index: {}]   ;;  %s680_s5 = inlined_call_operand.vmem [shape: bf16[128,1], index: 5, kind: input, shape index: {}]   ;;  %s681_s6 = inlined_call_operand.<no memory space> [shape: f32[1,1], index: 6, kind: input, shape index: {}]   ;;  %s682_s7 = inlined_call_operand.vmem [shape: f32[8,1], index: 7, kind: output, shape index: {}]  }
   0x1   :  { %v12_v0 = vstv %s681_s6 }
   0x2   :  { %13 = vst [vmem:[#allocation2] sm:$0x1] %v12_v0 }
   0x3   :  { %14 = vsyncpa [#allocation4], 0 }
   0x4   :  { %15 = vsyncpa [#allocation6], 0  ;;  %s520_s26 = smov [#allocation3]   ;;  %s521_s28 = smov [#allocation5]  }
   0x5   :  { %s22_s27 = sshll.u32 %s520_s26, 4  ;;  %s34_s29 = sshll.u32 %s521_s28, 4  ;;  %s23_s27 = int_to_ptr.vmem [resolvable:$true] %s22_s27  ;;  %s35_s29 = int_to_ptr.vmem [resolvable:$true] %s34_s29 }
   0x6   :  { %s472_s9 = scalar_lea.hbm %s675_s0, 64 }
   0x7   :  { %p473_p0 = scmp.ne.s32.totalorder %s675_s0, %s472_s9  ;;  %p476_p1 = scmp.lt.u32.totalorder %s472_s9, %s675_s0 }
   0x9   :  { %p478_p2 = pnand %p476_p1, %p473_p0 }
   0xb   :  { %481 = shalt.err (!%p478_p2)
}
   0xc   :  { %s482_s6 = scalar_lea.vmem %s23_s27, 64  ;;  %p487_p4 = scmp.lt.s32.totalorder %s23_s27, %s23_s27 }
   0xd   :  { %p483_p3 = scmp.ne.s32.totalorder %s23_s27, %s482_s6  ;;  %p488_p5 = scmp.lt.s32.totalorder %s482_s6, %s482_s6 }
   0xf   :  { %p489_p6 = por %p488_p5, %p487_p4 }
  0x11   :  { %p490_p7 = pnand %p489_p6, %p483_p3 }
  0x13   :  { %493 = shalt.err (!%p490_p7)
}
  0x14   :  { %25 = dma.hbm_to_vmem [thread:$0]  %s675_s0, 64, %s23_s27, [#allocation4]  }
  0x15   :  { %s494_s18 = scalar_lea.hbm %s677_s2, 16 }
  0x16   :  { %p495_p8 = scmp.ne.s32.totalorder %s677_s2, %s494_s18  ;;  %p498_p9 = scmp.lt.u32.totalorder %s494_s18, %s677_s2 }
  0x18   :  { %p500_p10 = pnand %p498_p9, %p495_p8 }
  0x1a   :  { %503 = shalt.err (!%p500_p10)
}
  0x1b   :  { %s504_s23 = scalar_lea.vmem %s35_s29, 16  ;;  %s508_s24 = scalar_lea.vmem %s35_s29, 32 }
  0x1c   :  { %p505_p11 = scmp.ne.s32.totalorder %s35_s29, %s504_s23  ;;  %p509_p12 = scmp.lt.s32.totalorder %s35_s29, %s35_s29 }
  0x1d   :  { %p510_p13 = scmp.lt.s32.totalorder %s508_s24, %s504_s23 }
  0x1f   :  { %p511_p0 = por %p510_p13, %p509_p12 }
  0x21   :  { %p512_p1 = pnand %p511_p0, %p505_p11 }
  0x23   :  { %515 = shalt.err (!%p512_p1)
}
  0x24   :  { %37 = dma.hbm_to_vmem [thread:$0]  %s677_s2, 16, %s35_s29, [#allocation6]  }
  0x25   :  { %516 = dma.done.wait [#allocation4], 64  }
  0x26   :  { %517 = vsyncadd [#allocation4], 4294967232 }
  0x27   :  { %518 = dma.done.wait [#allocation6], 16  }
  0x28   :  { %519 = vsyncadd [#allocation6], 4294967280  ;;  %v522_v1 = vmov 0.0   ;;  %vm523_vm0 = vmmov 0   ;;  %v450_v2 = vld [vmem:[%s676_s1] sm:$0xff]   ;;  %v451_v3 = vld [vmem:[%s676_s1 + $0x8] sm:$0xff]  }
  0x29   :  { %398 = vmatprep.subr.bf16.mxu0 %v522_v1  ;;  %402 = vmatprep.mubr.msk.bf16.mxu0 %vm523_vm0, %v522_v1  ;;  %v452_v4 = vld [vmem:[%s678_s3] sm:$0xff]   ;;  %v453_v5 = vld [vmem:[%s678_s3 + $0x8] sm:$0xff]   ;;  %vm77_vm1 = vcmask 261120   ;;  %v454_v7 = vld [vmem:[%s678_s3 + $0x10] sm:$0xff]   ;;  %vm347_vm2 = vcmask 7168  }
  0x2a   :  { %406 = vmatprep.subr.bf16.mxu1 %v522_v1  ;;  %422 = vmatprep.mubr.msk.bf16.mxu1 %vm523_vm0, %v522_v1  ;;  %v53_v6 = vld [vmem:[#allocation3] sm:$0xf]  ;;  %v455_v8 = vld [vmem:[%s678_s3 + $0x18] sm:$0xff]   ;;  %v457_v10 = vld [vmem:[%s678_s3 + $0x28] sm:$0xff]  }
  0x2b   :  { %399 = vmatpush3.bf16.msra.mxu0 %v450_v2  ;;  %407 = vmatpush3.bf16.msra.mxu1 %v452_v4  ;;  %v456_v9 = vld [vmem:[%s678_s3 + $0x20] sm:$0xff]   ;;  %v458_v11 = vld [vmem:[%s678_s3 + $0x30] sm:$0xff]   ;;  %v459_v12 = vld [vmem:[%s678_s3 + $0x38] sm:$0xff]  }
  0x2c   :  { %400 = vmatprep.subr.bf16.mxu0 %v522_v1  ;;  %408 = vmatprep.subr.bf16.mxu1 %v522_v1  ;;  %v460_v13 = vld [vmem:[%s680_s5] sm:$0xff]   ;;  %v461_v14 = vld [vmem:[%s680_s5 + $0x8] sm:$0xff]   ;;  %v462_v15 = vld [vmem:[%s680_s5 + $0x10] sm:$0xff]  }
  0x2d   :  { %v463_v16 = vld [vmem:[%s680_s5 + $0x18] sm:$0xff]   ;;  %v355_v17 = vld [vmem:[#allocation5] ss:$0 sm:$0xff]  ;;  %v465_v26 = vld [vmem:[%s680_s5 + $0x28] sm:$0xff]  }
  0x2e   :  { %v464_v25 = vld [vmem:[%s680_s5 + $0x20] sm:$0xff]   ;;  %v466_v27 = vld [vmem:[%s680_s5 + $0x30] sm:$0xff]   ;;  %v467_v28 = vld [vmem:[%s680_s5 + $0x38] sm:$0xff]  }
  0x2f   :  { %401 = vmatpush3.bf16.msra.mxu0 %v451_v3  ;;  %409 = vmatpush3.bf16.msra.mxu1 %v453_v5  ;;  %v359_v29 = vld [vmem:[%s679_s4] ss:$0 sm:$0xff] }
  0x30   :  { %426 = vmatprep.subr.bf16.mxu0 %v522_v1  ;;  %410 = vmatprep.subr.bf16.mxu1 %v522_v1  ;;  %v368_v37 = vld [vmem:[#allocation2] ss:$0 sm:$0xff] }
  0x32   :  { %403 = vmatmul.mubr.msk.bf16.vlgmr.msra.gmra.mrb[0].mxu0 %vm77_vm1, %v53_v6 }
  0x33   :  { %442 = vmatprep.mubr.msk.bf16.mxu0 %vm523_vm0, %v522_v1  ;;  %411 = vmatpush3.bf16.msra.mxu1 %v454_v7 }
  0x34   :  { %412 = vmatprep.subr.bf16.mxu1 %v522_v1  ;;  %427 = vmatpush3.bf16.msra.mxu0 %v460_v13 }
  0x35   :  { %428 = vmatprep.subr.bf16.mxu0 %v522_v1 }
  0x37   :  { %413 = vmatpush3.bf16.msra.mxu1 %v455_v8 }
  0x38   :  { %414 = vmatprep.subr.bf16.mxu1 %v522_v1  ;;  %429 = vmatpush3.bf16.msra.mxu0 %v461_v14 }
  0x39   :  { %430 = vmatprep.subr.bf16.mxu0 %v522_v1 }
  0x3b   :  { %415 = vmatpush3.bf16.msra.mxu1 %v456_v9 }
  0x3c   :  { %416 = vmatprep.subr.bf16.mxu1 %v522_v1  ;;  %431 = vmatpush3.bf16.msra.mxu0 %v462_v15 }
  0x3d   :  { %432 = vmatprep.subr.bf16.mxu0 %v522_v1 }
  0x3f   :  { %417 = vmatpush3.bf16.msra.mxu1 %v457_v10 }
  0x40   :  { %418 = vmatprep.subr.bf16.mxu1 %v522_v1  ;;  %433 = vmatpush3.bf16.msra.mxu0 %v463_v16 }
  0x41   :  { %434 = vmatprep.subr.bf16.mxu0 %v522_v1 }
  0x43   :  { %419 = vmatpush3.bf16.msra.mxu1 %v458_v11 }
  0x44   :  { %420 = vmatprep.subr.bf16.mxu1 %v522_v1  ;;  %435 = vmatpush3.bf16.msra.mxu0 %v464_v25 }
  0x45   :  { %436 = vmatprep.subr.bf16.mxu0 %v522_v1 }
  0x47   :  { %421 = vmatpush3.bf16.msra.mxu1 %v459_v12 }
  0x48   :  { %437 = vmatpush3.bf16.msra.mxu0 %v465_v26 }
  0x49   :  { %438 = vmatprep.subr.bf16.mxu0 %v522_v1 }
  0x4c   :  { %439 = vmatpush3.bf16.msra.mxu0 %v466_v27 }
  0x4d   :  { %440 = vmatprep.subr.bf16.mxu0 %v522_v1 }
  0x50   :  { %441 = vmatpush3.bf16.msra.mxu0 %v467_v28 }
 0x105   :  { %v115_v18 = vpop.f32.mrb[0].mxu0 }
 0x106   :  { %v116_v19 = vadd.f32 %v355_v17, %v115_v18  ;;  %v404_v20 = vpop.f32.mrb[1].mxu0 }
 0x107   :  { %v118_v21 = vpop.f32.mrb[2].mxu0 }
 0x108   :  { %468 = vtanh.f32 %v116_v19  ;;  %v405_v22 = vpop.f32.mrb[3].mxu0 }
 0x112   :  { %v469_v23 = vpop.eup %468 }
 0x113   :  { %v122_v24 = vpack.c.bf16 %v469_v23, %v469_v23 }
 0x115   :  { %423 = vmatmul.mubr.bf16.vlgmr.msra.gmra.mrb[0].mxu1 %v122_v24 }
 0x1e8   :  { %v228_v30 = vpop.f32.mrb[0].mxu1 }
 0x1e9   :  { %v229_v31 = vadd.f32 %v359_v29, %v228_v30  ;;  %v424_v32 = vpop.f32.mrb[1].mxu1 }
 0x1ea   :  { %v231_v33 = vpop.f32.mrb[2].mxu1 }
 0x1eb   :  { %470 = vtanh.f32 %v229_v31  ;;  %v425_v34 = vpop.f32.mrb[3].mxu1 }
 0x1f5   :  { %v471_v35 = vpop.eup %470 }
 0x1f6   :  { %v235_v36 = vpack.c.bf16 %v471_v35, %v471_v35 }
 0x1f8   :  { %443 = vmatmul.mubr.bf16.vlgmr.msra.gmra.mrb[4].mxu0 %v235_v36 }
 0x2cb   :  { %v341_v38 = vpop.f32.mrb[4].mxu0 }
 0x2cc   :  { %v342_v39 = vadd.f32 %v368_v37, %v341_v38  ;;  %v444_v40 = vpop.f32.mrb[5].mxu0 }
 0x2cd   :  { %v344_v41 = vpop.f32.mrb[6].mxu0 }
 0x2ce   :  { %348 = vst.msk [vmem:[%s682_s7] sm:$0xff] %vm347_vm2, %v342_v39  ;;  %v445_v42 = vpop.f32.mrb[7].mxu0 }
 0x2cf   :  { %353 = vsyncpa [#allocation4], 1 }
 0x2d0   :  { %354 = vsyncpa [#allocation6], 1 }

</bundles_post_ra>
